<compile_context>
chip_gen: v5e
topology: v5e:2x2
jax: 0.10.0
libtpu: 0.0.40
codegen_flags: <defaults>
</compile_context>

<pallas_src>
import functools

import jax
import jax.numpy as jnp
from jax.experimental import pallas as pl
from jax.experimental.pallas import tpu as pltpu


def _decoder_kernel(tok_ref,                       # (T,) int32, SMEM (scalar prefetch)
                    emb_ref,                       # (V, H)  f32  VMEM, resident
                    h0_ref,                        # (1, H)  f32
                    w_g_ref,                       # (2H,4H) bf16 gate slab, resident
                    b_ref,                         # (1, 4H+V) f32 bias slab, resident
                    w_out_ref,                     # (H, V)  bf16, resident
                    logp_ref,                      # (T, V)  f32, resident output slab
                    h_ref,                         # (1, H)  f32, hidden carry + output
                    *, hidden_size, n_layers):
    H = hidden_size
    t = pl.program_id(0)

    # Initialize the hidden-state carry from h0 on the first step.
    @pl.when(t == 0)
    def _():
        h_ref[...] = h0_ref[...]

    # Embedding lookup: dynamic sublane slice from the VMEM-resident table.
    tok = tok_ref[t]
    x = emb_ref[pl.ds(tok, 1), :]                  # (1, H) f32
    h = h_ref[...]                                 # (1, H) f32

    w_g = w_g_ref[...]                             # (2H, 4H) bf16
    b = b_ref[...]                                 # (1, 4H+V) f32
    b_g = b[:, :4 * H]                             # gate biases  [b_rz | b_in | b_hn]
    b_o = b[:, 4 * H:]                             # output bias  (lane-128-aligned)

    # forward() applies relu + the SAME single-layer GRU n_layers times.
    for _ in range(n_layers):
        xr = jnp.maximum(x, 0.0)                                       # F.relu
        lhs = jnp.concatenate([xr, h], axis=1).astype(w_g.dtype)       # (1, 2H) bf16
        # One MXU push; output = [rz_sum | n_x | n_h] + biases, 4H lanes.
        g = jnp.dot(lhs, w_g, preferred_element_type=jnp.float32) + b_g
        rz = jax.nn.sigmoid(g[:, :2 * H])                              # (1, 2H)
        r = rz[:, :H]
        z = rz[:, H:]
        n = jnp.tanh(g[:, 2 * H:3 * H] + r * g[:, 3 * H:4 * H])
        h = (1.0 - z) * n + z * h                                      # new hidden
        x = h                                                          # GRU output

    # out = Linear(H, V); log_softmax over the vocab (last) dim.
    w_out = w_out_ref[...]                                             # (H, V) bf16
    logits = jnp.dot(h.astype(w_out.dtype), w_out,
                     preferred_element_type=jnp.float32) + b_o
    m = jnp.max(logits, axis=-1, keepdims=True)
    shifted = logits - m
    lse = jnp.log(jnp.sum(jnp.exp(shifted), axis=-1, keepdims=True))
    logp_ref[pl.ds(t, 1), :] = shifted - lse
    h_ref[...] = h


def _call_kernel(tokens, h0, params, n_layers):
    emb = params["embedding"]                      # (V, H) f32
    V, H = emb.shape
    T = tokens.shape[0]

    kernel = functools.partial(_decoder_kernel, hidden_size=H, n_layers=n_layers)

    grid_spec = pltpu.PrefetchScalarGridSpec(
        num_scalar_prefetch=1,
        grid=(T,),
        in_specs=[
            pl.BlockSpec((V, H), lambda t, tok: (0, 0)),            # embedding table
            pl.BlockSpec((1, H), lambda t, tok: (0, 0)),            # h0
            pl.BlockSpec((2 * H, 4 * H), lambda t, tok: (0, 0)),    # gate weight slab
            pl.BlockSpec((1, 4 * H + V), lambda t, tok: (0, 0)),    # packed bias slab
            pl.BlockSpec((H, V), lambda t, tok: (0, 0)),            # W_out^T
        ],
        out_specs=(
            pl.BlockSpec((T, V), lambda t, tok: (0, 0)),            # log-probs slab
            pl.BlockSpec((1, H), lambda t, tok: (0, 0)),            # hidden carry
        ),
    )

    logp, h_new = pl.pallas_call(
        kernel,
        grid_spec=grid_spec,
        out_shape=(
            jax.ShapeDtypeStruct((T, V), jnp.float32),
            jax.ShapeDtypeStruct((1, H), jnp.float32),
        ),
        compiler_params=pltpu.CompilerParams(
            dimension_semantics=("arbitrary",)),     # sequential: hidden-state carry
    )(
        tokens,                                      # scalar prefetch (SMEM)
        emb, h0,
        params["w_gates"], params["bias"], params["w_out_t"],
    )
    return logp, h_new


@functools.partial(jax.jit, static_argnames=("n_layers",))
def decoder_rnn_forward(token, hidden, params, *, n_layers=1):
    """Single step (module parity). token: int32 scalar; hidden: (1, 1, H).

    Returns (log_probs (1, V), new_hidden (1, 1, H)).
    """
    H = hidden.shape[-1]
    tok = jnp.reshape(jnp.asarray(token, jnp.int32), (1,))
    h0 = hidden.reshape(1, H)
    logp, h_new = _call_kernel(tok, h0, params, n_layers)
    return logp, h_new.reshape(1, 1, H)


@functools.partial(jax.jit, static_argnames=("n_layers",))
def decoder_rnn_forward_seq(tokens, hidden, params, *, n_layers=1):
    """T teacher-forced decode steps fused in ONE pallas_call (weights stay
    VMEM-resident, hidden carried in VMEM across the grid).

    tokens: (T,) int32; hidden: (1, 1, H).
    Returns (log_probs (T, V), final_hidden (1, 1, H)).
    """
    H = hidden.shape[-1]
    tokens = jnp.asarray(tokens, jnp.int32).reshape(-1)
    h0 = hidden.reshape(1, H)
    logp, h_new = _call_kernel(tokens, h0, params, n_layers)
    return logp, h_new.reshape(1, 1, H)


def init_params(key, hidden_size, output_size):
    """Deterministic init matching the module's parameter shapes.

    nn.GRU(H, H): weight_ih_l0 (3H, H) [r,z,n], weight_hh_l0 (3H, H), biases (3H,)
    nn.Linear(H, V): weight (V, H), bias (V,)
    nn.Embedding(V, H): (V, H)

    Gate weights are stored as the bf16 block matrix (2H, 4H)
        [[W_ir^T W_iz^T | W_in^T |   0   ],
         [W_hr^T W_hz^T |   0    | W_hn^T]]
    and all biases packed into one f32 slab (1, 4H+V) = [b_rz_sum|b_in|b_hn|b_out].
    """
    H, V = hidden_size, output_size
    ks = jax.random.split(key, 7)
    s = 1.0 / float(H) ** 0.5
    u = lambda k, shape: jax.random.uniform(k, shape, jnp.float32, -s, s)

    emb = jax.random.normal(ks[0], (V, H), jnp.float32)
    w_ih = u(ks[1], (3 * H, H))        # torch layout, gate order r, z, n
    w_hh = u(ks[2], (3 * H, H))
    b_ih = u(ks[3], (3 * H,))
    b_hh = u(ks[4], (3 * H,))
    w_out = u(ks[5], (V, H))
    b_out = u(ks[6], (V,))

    zeros = jnp.zeros((H, H), jnp.float32)
    top = jnp.concatenate([w_ih[:2 * H].T, w_ih[2 * H:].T, zeros], axis=1)   # (H, 4H)
    bot = jnp.concatenate([w_hh[:2 * H].T, zeros, w_hh[2 * H:].T], axis=1)   # (H, 4H)
    w_gates = jnp.concatenate([top, bot], axis=0).astype(jnp.bfloat16)       # (2H, 4H)

    bias = jnp.concatenate([
        b_ih[:2 * H] + b_hh[:2 * H],   # r, z biases pre-summed
        b_ih[2 * H:],                  # b_in
        b_hh[2 * H:],                  # b_hn
        b_out,                         # output bias (lane-128-aligned for H=32)
    ]).reshape(1, 4 * H + V)

    return {
        "embedding": emb,
        "w_gates": w_gates,
        "bias": bias,
        "w_out_t": w_out.T.astype(jnp.bfloat16),   # (H, V)
    }


def _ref_forward_seq(tokens, hidden, params, n_layers=1):
    """Pure-JAX reference mirroring the kernel math (same bf16 rounding)."""
    emb = params["embedding"]
    V, H = emb.shape
    hi = jax.lax.Precision.HIGHEST
    w_g = params["w_gates"].astype(jnp.float32)
    w_out = params["w_out_t"].astype(jnp.float32)
    b = params["bias"]
    b_g, b_o = b[:, :4 * H], b[:, 4 * H:]
    h = hidden.reshape(1, H)
    outs = []
    for t in range(int(tokens.shape[0])):
        x = emb[tokens[t]].reshape(1, H)
        for _ in range(n_layers):
            xr = jnp.maximum(x, 0.0)
            lhs = jnp.concatenate([xr, h], axis=1).astype(jnp.bfloat16).astype(jnp.float32)
            g = jnp.dot(lhs, w_g, precision=hi) + b_g
            rz = jax.nn.sigmoid(g[:, :2 * H])
            r, z = rz[:, :H], rz[:, H:]
            n = jnp.tanh(g[:, 2 * H:3 * H] + r * g[:, 3 * H:4 * H])
            h = (1.0 - z) * n + z * h
            x = h
        logits = jnp.dot(h.astype(jnp.bfloat16).astype(jnp.float32), w_out,
                         precision=hi) + b_o
        outs.append(jax.nn.log_softmax(logits, axis=-1))
    return jnp.concatenate(outs, axis=0), h.reshape(1, 1, H)


if __name__ == "__main__":
    HIDDEN = 32
    VOCAB = 64
    N_LAYERS = 1
    T = 8

    key = jax.random.PRNGKey(0)
    params = init_params(key, HIDDEN, VOCAB)

    token = jnp.array(5, dtype=jnp.int32)               # decoder input token id
    hidden = jnp.zeros((1, 1, HIDDEN), jnp.float32)     # DecoderRNN.initHidden()

    # --- single step: exact module forward(input, hidden) semantics ---------
    log_probs, new_hidden = decoder_rnn_forward(token, hidden, params,
                                                n_layers=N_LAYERS)
    jax.block_until_ready((log_probs, new_hidden))

    assert log_probs.shape == (1, VOCAB)
    assert new_hidden.shape == (1, 1, HIDDEN)
    # log_softmax rows must (exp-)sum to ~1
    assert jnp.allclose(jnp.sum(jnp.exp(log_probs), axis=-1), 1.0, atol=1e-4)

    ref_lp, ref_h = _ref_forward_seq(jnp.array([5], jnp.int32), hidden, params,
                                     n_layers=N_LAYERS)
    assert jnp.allclose(log_probs, ref_lp, atol=1e-3, rtol=1e-3)
    assert jnp.allclose(new_hidden, ref_h, atol=1e-3, rtol=1e-3)

    # --- T fused decode steps: amortizes launch + weight DMA over the grid --
    tokens = jax.random.randint(jax.random.PRNGKey(1), (T,), 0, VOCAB,
                                dtype=jnp.int32)
    lp_seq, h_seq = decoder_rnn_forward_seq(tokens, hidden, params,
                                            n_layers=N_LAYERS)
    jax.block_until_ready((lp_seq, h_seq))

    assert lp_seq.shape == (T, VOCAB)
    assert h_seq.shape == (1, 1, HIDDEN)
    ref_lp_seq, ref_h_seq = _ref_forward_seq(tokens, hidden, params,
                                             n_layers=N_LAYERS)
    assert jnp.allclose(lp_seq, ref_lp_seq, atol=1e-3, rtol=1e-3)
    assert jnp.allclose(h_seq, ref_h_seq, atol=1e-3, rtol=1e-3)

    print("KERNEL_OK")
</pallas_src>

<mosaic_0001>
module attributes {stable_mosaic.version = 11 : i64} {
  func.func @_decoder_kernel(%arg0: i32, %arg1: memref<1xi32, #tpu.memory_space<smem>>, %arg2: memref<64x32xf32, #tpu.memory_space<vmem>>, %arg3: memref<1x32xf32, #tpu.memory_space<vmem>>, %arg4: memref<64x128xbf16, #tpu.memory_space<vmem>>, %arg5: memref<1x192xf32, #tpu.memory_space<vmem>>, %arg6: memref<32x64xbf16, #tpu.memory_space<vmem>>, %arg7: memref<1x64xf32, #tpu.memory_space<vmem>>, %arg8: memref<1x32xf32, #tpu.memory_space<vmem>>) attributes {dimension_semantics = [#tpu.dimension_semantics<arbitrary>], iteration_bounds = array<i64: 1>, scalar_prefetch = 1 : i64, scratch_operands = 0 : i64, tpu.core_type = #tpu.core_type<tc>, window_params = [{pipeline_mode = #tpu.pipeline_mode<synchronous>, transform_indices = @transform_0, window_bounds = array<i64: 64, 32>}, {pipeline_mode = #tpu.pipeline_mode<synchronous>, transform_indices = @transform_1, window_bounds = array<i64: 1, 32>}, {pipeline_mode = #tpu.pipeline_mode<synchronous>, transform_indices = @transform_2, window_bounds = array<i64: 64, 128>}, {pipeline_mode = #tpu.pipeline_mode<synchronous>, transform_indices = @transform_3, window_bounds = array<i64: 1, 192>}, {pipeline_mode = #tpu.pipeline_mode<synchronous>, transform_indices = @transform_4, window_bounds = array<i64: 32, 64>}, {pipeline_mode = #tpu.pipeline_mode<synchronous>, transform_indices = @transform_5, window_bounds = array<i64: 1, 64>}, {pipeline_mode = #tpu.pipeline_mode<synchronous>, transform_indices = @transform_6, window_bounds = array<i64: 1, 32>}]} {
    %c0_i32 = arith.constant 0 : i32
    %0 = arith.cmpi eq, %arg0, %c0_i32 : i32
    %1 = arith.extui %0 : i1 to i32
    %c0_i32_0 = arith.constant 0 : i32
    %2 = arith.cmpi ne, %1, %c0_i32_0 : i32
    scf.if %2 {
      %c0_18 = arith.constant 0 : index
      %c0_19 = arith.constant 0 : index
      %53 = vector.load %arg3[%c0_18, %c0_19] : memref<1x32xf32, #tpu.memory_space<vmem>>, vector<1x32xf32>
      %c0_20 = arith.constant 0 : index
      %c0_21 = arith.constant 0 : index
      %54 = vector.load %arg8[%c0_20, %c0_21] : memref<1x32xf32, #tpu.memory_space<vmem>>, vector<1x32xf32>
      tpu.vector_store %arg8[%c0_20, %c0_21], %53 {strides = array<i32>} : memref<1x32xf32, #tpu.memory_space<vmem>>, vector<1x32xf32>,
    } else {
    }
    %3 = arith.index_cast %arg0 : i32 to index
    %4 = memref.load %arg1[%3] : memref<1xi32, #tpu.memory_space<smem>>
    %5 = arith.index_cast %4 : i32 to index
    %c0 = arith.constant 0 : index
    %6 = vector.load %arg2[%5, %c0] : memref<64x32xf32, #tpu.memory_space<vmem>>, vector<1x32xf32>
    %c0_1 = arith.constant 0 : index
    %c0_2 = arith.constant 0 : index
    %7 = vector.load %arg8[%c0_1, %c0_2] : memref<1x32xf32, #tpu.memory_space<vmem>>, vector<1x32xf32>
    %c0_3 = arith.constant 0 : index
    %c0_4 = arith.constant 0 : index
    %8 = vector.load %arg4[%c0_3, %c0_4] : memref<64x128xbf16, #tpu.memory_space<vmem>>, vector<64x128xbf16>
    %c0_5 = arith.constant 0 : index
    %c0_6 = arith.constant 0 : index
    %9 = vector.load %arg5[%c0_5, %c0_6] : memref<1x192xf32, #tpu.memory_space<vmem>>, vector<1x192xf32>
    %10 = vector.extract_strided_slice %9 {offsets = [0, 0], sizes = [1, 128], strides = [1, 1]} : vector<1x192xf32> to vector<1x128xf32>
    %11 = vector.extract_strided_slice %9 {offsets = [0, 128], sizes = [1, 64], strides = [1, 1]} : vector<1x192xf32> to vector<1x64xf32>
    %cst = arith.constant 0.000000e+00 : f32
    %12 = vector.broadcast %cst : f32 to vector<1x32xf32>
    %13 = arith.maximumf %6, %12 : vector<1x32xf32>
    %14 = tpu.concatenate %13, %7 in 1 : vector<1x32xf32>, vector<1x32xf32> -> vector<1x64xf32>
    %15 = arith.truncf %14 : vector<1x64xf32> to vector<1x64xbf16>
    %cst_7 = arith.constant dense<0.000000e+00> : vector<1x128xf32>
    %16 = tpu.matmul %15, %8, %cst_7 {dimension_numbers = #tpu.dot_dimension_numbers<[1], [0], [0], [1], [0, 0, 1, 1], [], []>} : vector<1x64xbf16>, vector<64x128xbf16>, vector<1x128xf32> -> vector<1x128xf32>
    %17 = arith.addf %16, %10 : vector<1x128xf32>
    %18 = vector.extract_strided_slice %17 {offsets = [0, 0], sizes = [1, 64], strides = [1, 1]} : vector<1x128xf32> to vector<1x64xf32>
    %19 = arith.negf %18 : vector<1x64xf32>
    %20 = math.exp %19 : vector<1x64xf32>
    %cst_8 = arith.constant 1.000000e+00 : f32
    %21 = vector.broadcast %cst_8 : f32 to vector<1x64xf32>
    %22 = arith.addf %21, %20 : vector<1x64xf32>
    %23 = arith.divf %21, %22 : vector<1x64xf32>
    %24 = vector.extract_strided_slice %23 {offsets = [0, 0], sizes = [1, 32], strides = [1, 1]} : vector<1x64xf32> to vector<1x32xf32>
    %25 = vector.extract_strided_slice %23 {offsets = [0, 32], sizes = [1, 32], strides = [1, 1]} : vector<1x64xf32> to vector<1x32xf32>
    %26 = vector.extract_strided_slice %17 {offsets = [0, 64], sizes = [1, 32], strides = [1, 1]} : vector<1x128xf32> to vector<1x32xf32>
    %27 = vector.extract_strided_slice %17 {offsets = [0, 96], sizes = [1, 32], strides = [1, 1]} : vector<1x128xf32> to vector<1x32xf32>
    %28 = arith.mulf %24, %27 : vector<1x32xf32>
    %29 = arith.addf %26, %28 : vector<1x32xf32>
    %30 = math.tanh %29 : vector<1x32xf32>
    %cst_9 = arith.constant 1.000000e+00 : f32
    %31 = vector.broadcast %cst_9 : f32 to vector<1x32xf32>
    %32 = arith.subf %31, %25 : vector<1x32xf32>
    %33 = arith.mulf %32, %30 : vector<1x32xf32>
    %34 = arith.mulf %25, %7 : vector<1x32xf32>
    %35 = arith.addf %33, %34 : vector<1x32xf32>
    %c0_10 = arith.constant 0 : index
    %c0_11 = arith.constant 0 : index
    %36 = vector.load %arg6[%c0_10, %c0_11] : memref<32x64xbf16, #tpu.memory_space<vmem>>, vector<32x64xbf16>
    %37 = arith.truncf %35 : vector<1x32xf32> to vector<1x32xbf16>
    %cst_12 = arith.constant dense<0.000000e+00> : vector<1x64xf32>
    %38 = tpu.matmul %37, %36, %cst_12 {dimension_numbers = #tpu.dot_dimension_numbers<[1], [0], [0], [1], [0, 0, 1, 1], [], []>} : vector<1x32xbf16>, vector<32x64xbf16>, vector<1x64xf32> -> vector<1x64xf32>
    %39 = arith.addf %38, %11 : vector<1x64xf32>
    %cst_13 = arith.constant dense<0xFF800000> : vector<1xf32>
    %40 = vector.multi_reduction <maximumf>, %39, %cst_13 [1] : vector<1x64xf32> to vector<1xf32>
    %41 = vector.shape_cast %40 : vector<1xf32> to vector<1x1xf32>
    %42 = vector.broadcast %41 : vector<1x1xf32> to vector<1x64xf32>
    %43 = arith.subf %39, %42 : vector<1x64xf32>
    %44 = math.exp %43 : vector<1x64xf32>
    %cst_14 = arith.constant dense<0.000000e+00> : vector<1xf32>
    %45 = vector.multi_reduction <add>, %44, %cst_14 [1] : vector<1x64xf32> to vector<1xf32>
    %46 = vector.shape_cast %45 : vector<1xf32> to vector<1x1xf32>
    %47 = math.log %46 : vector<1x1xf32>
    %48 = vector.broadcast %47 : vector<1x1xf32> to vector<1x64xf32>
    %49 = arith.subf %43, %48 : vector<1x64xf32>
    %50 = arith.index_cast %arg0 : i32 to index
    %c0_15 = arith.constant 0 : index
    %51 = vector.load %arg7[%50, %c0_15] : memref<1x64xf32, #tpu.memory_space<vmem>>, vector<1x64xf32>
    tpu.vector_store %arg7[%50, %c0_15], %49 {strides = array<i32>} : memref<1x64xf32, #tpu.memory_space<vmem>>, vector<1x64xf32>,
    %c0_16 = arith.constant 0 : index
    %c0_17 = arith.constant 0 : index
    %52 = vector.load %arg8[%c0_16, %c0_17] : memref<1x32xf32, #tpu.memory_space<vmem>>, vector<1x32xf32>
    tpu.vector_store %arg8[%c0_16, %c0_17], %35 {strides = array<i32>} : memref<1x32xf32, #tpu.memory_space<vmem>>, vector<1x32xf32>,
    return
  }
  func.func @transform_0(%arg0: i32, %arg1: memref<1xi32, #tpu.memory_space<smem>>) -> (i32, i32) {
    %c0_i32 = arith.constant 0 : i32
    %c0_i32_0 = arith.constant 0 : i32
    %c0_i32_1 = arith.constant 0 : i32
    return %c0_i32, %c0_i32_0 : i32, i32
  }
  func.func @transform_1(%arg0: i32, %arg1: memref<1xi32, #tpu.memory_space<smem>>) -> (i32, i32) {
    %c0_i32 = arith.constant 0 : i32
    %c0_i32_0 = arith.constant 0 : i32
    %c0_i32_1 = arith.constant 0 : i32
    return %c0_i32, %c0_i32_0 : i32, i32
  }
  func.func @transform_2(%arg0: i32, %arg1: memref<1xi32, #tpu.memory_space<smem>>) -> (i32, i32) {
    %c0_i32 = arith.constant 0 : i32
    %c0_i32_0 = arith.constant 0 : i32
    %c0_i32_1 = arith.constant 0 : i32
    return %c0_i32, %c0_i32_0 : i32, i32
  }
  func.func @transform_3(%arg0: i32, %arg1: memref<1xi32, #tpu.memory_space<smem>>) -> (i32, i32) {
    %c0_i32 = arith.constant 0 : i32
    %c0_i32_0 = arith.constant 0 : i32
    %c0_i32_1 = arith.constant 0 : i32
    return %c0_i32, %c0_i32_0 : i32, i32
  }
  func.func @transform_4(%arg0: i32, %arg1: memref<1xi32, #tpu.memory_space<smem>>) -> (i32, i32) {
    %c0_i32 = arith.constant 0 : i32
    %c0_i32_0 = arith.constant 0 : i32
    %c0_i32_1 = arith.constant 0 : i32
    return %c0_i32, %c0_i32_0 : i32, i32
  }
  func.func @transform_5(%arg0: i32, %arg1: memref<1xi32, #tpu.memory_space<smem>>) -> (i32, i32) {
    %c0_i32 = arith.constant 0 : i32
    %c0_i32_0 = arith.constant 0 : i32
    %c0_i32_1 = arith.constant 0 : i32
    return %c0_i32, %c0_i32_0 : i32, i32
  }
  func.func @transform_6(%arg0: i32, %arg1: memref<1xi32, #tpu.memory_space<smem>>) -> (i32, i32) {
    %c0_i32 = arith.constant 0 : i32
    %c0_i32_0 = arith.constant 0 : i32
    %c0_i32_1 = arith.constant 0 : i32
    return %c0_i32, %c0_i32_0 : i32, i32
  }
}

</mosaic_0001>

<bundles_post_ra>
// kernel: decoder_rnn_forward.1
= control target key start
LH: loop header
LB: loop body
LE: loop exit
PB: predicated region body
PF: predicated region fallthrough
CT: control target
= control target key end

     0   :  { %14 = vsyncpa [#allocation5], 0  ;;  %vm32_vm0 = vcmask 253952   ;;  %s416_s0 = inlined_call_operand.<no memory space> [shape: s32[1], index: 0, kind: input, shape index: {}]   ;;  %s417_s1 = inlined_call_operand.vmem [shape: f32[64,32], index: 1, kind: input, shape index: {}]   ;;  %s418_s2 = inlined_call_operand.vmem [shape: f32[1,32], index: 2, kind: input, shape index: {}]   ;;  %s419_s3 = inlined_call_operand.vmem [shape: bf16[64,128], index: 3, kind: input, shape index: {}]   ;;  %s420_s4 = inlined_call_operand.vmem [shape: f32[1,192], index: 4, kind: input, shape index: {}]   ;;  %s421_s5 = inlined_call_operand.vmem [shape: bf16[32,64], index: 5, kind: input, shape index: {}]   ;;  %s422_s6 = inlined_call_operand.hbm [shape: f32[1,64], index: 6, kind: output, shape index: {0}]   ;;  %s423_s7 = inlined_call_operand.hbm [shape: f32[1,32], index: 7, kind: output, shape index: {1}]  }
   0x1   :  { %v31_v0 = vld [vmem:[%s418_s2] sm:$0x1]  ;;  %v257_v1 = vld [vmem:[%s419_s3 + $0x18] sm:$0xff]  ;;  %v256_v2 = vld [vmem:[%s419_s3 + $0x10] sm:$0xff] }
   0x2   :  { %33 = vst.msk [vmem:[#allocation6] sm:$0x1] %vm32_vm0, %v31_v0  ;;  %88 = vmatpush.bf16.msra.mxu0 %v257_v1 }
   0x3   :  { %15 = vsyncpa [#allocation7], 0  ;;  %v255_v3 = vld [vmem:[%s419_s3 + $0x8] sm:$0xff]  ;;  %s328_s2 = smov 32   ;;  %v254_v5 = vld [vmem:[%s419_s3] sm:$0xff]  ;;  %s35_s15 = scalar_lea.vmem %s417_s1, %s416_s0  ;;  %vm53_vm1 = vcmask 261120  }
   0x4   :  { %v36_v6 = vld [vmem:[%s35_s15] sm:$0x1]  ;;  %vm80_vm2 = vcmask 523264   ;;  %s329_s0 = smov 64   ;;  %s330_s1 = smov 96   ;;  %v259_v33 = vld [vmem:[%s421_s5 + $0x8] sm:$0xff] }
   0x5   :  { %v47_v7 = vmax.f32 %v36_v6, 0.0  ;;  %v46_v11 = vld [vmem:[%s420_s4] sm:$0x3]  ;;  %167 = vmatpush.bf16.msra.mxu1 %v259_v33  ;;  %vm174_vm7 = vcmask 516096   ;;  %s212_s23 = sshll.u32 %s423_s7, 4  ;;  %s332_s24 = smov [#allocation4]   ;;  %s213_s23 = int_to_ptr.hbm [resolvable:$true] %s212_s23 }
   0x6   :  { %89 = vmatpush.bf16.msra.mxu0 %v256_v2  ;;  %v258_v34 = vld [vmem:[%s421_s5] sm:$0xff]  ;;  %v156_v43 = vperm.slane %v46_v11, 1  ;;  %s331_s5 = smov [#allocation6]   ;;  %s199_s25 = sshll.u32 %s332_s24, 4  ;;  %s200_s25 = int_to_ptr.vmem [resolvable:$true] %s199_s25 }
   0x7   :  { %s210_s20 = sshll.u32 %s331_s5, 4  ;;  %s201_s28 = sshll.u32 %s422_s6, 4  ;;  %s211_s20 = int_to_ptr.vmem [resolvable:$true] %s210_s20  ;;  %s202_s28 = int_to_ptr.hbm [resolvable:$true] %s201_s28 }
   0x9   :  { %v265_v4 = vld [vmem:[#allocation6] ss:$0 sm:$0xff]  ;;  %168 = vmatpush.bf16.msra.mxu1 %v258_v34 }
   0xa   :  { %50 = vrot.lane.b32.xlu0 %v265_v4, %s328_s2  ;;  %90 = vmatpush.bf16.msra.mxu0 %v255_v3 }
   0xe   :  { %91 = vmatpush.bf16.msra.mxu0 %v254_v5 }
  0x7c   :  { %v51_v8 = vpop.permute.xlu0 %50 }
  0x7d   :  { %v54_v9 = vsel %vm53_vm1, %v47_v7, %v51_v8 }
  0x7e   :  { %v55_v10 = vpack.c.bf16 %v54_v9, %v54_v9 }
  0x80   :  { %243 = vmatmul.msk.bf16.vlgmr.msra.gmra.mxu0 %vm80_vm2, %v55_v10 }
  0xfd   :  { %v93_v12 = vpop.f32.mrf.mxu0 }
  0xfe   :  { %v94_v13 = vadd.f32 %v93_v12, %v46_v11 }
 0x100   :  { %117 = vrot.lane.b32.xlu0 %v94_v13, %s328_s2  ;;  %v244_v15 = vmul.f32 -1.442695, %v94_v13 }
 0x102   :  { %266 = vpow2.f32 %v244_v15 }
 0x105   :  { %v95_v14 = vpop.f32.mrf.mxu0 }
 0x108   :  { %v267_v16 = vpop.eup %266 }
 0x109   :  { %v100_v17 = vadd.f32 1.0, %v267_v16 }
 0x10b   :  { %268 = vrcp.f32 %v100_v17  ;;  %v112_v23 = vand.u32 2147483648, %v100_v17  ;;  %vm106_vm4 = vweird.f32 %v100_v17  ;;  %v110_v24 = vand.u32 2147483647, %v100_v17 }
 0x10d   :  { %v113_v26 = vor.u32 1.1754944e-38, %v112_v23  ;;  %vm111_vm6 = vcmp.eq.f32.partialorder %v110_v24, 8.507059e+37 }
 0x111   :  { %v269_v18 = vpop.eup %268 }
 0x112   :  { %v102_v19 = vmul.f32 %v269_v18, %v100_v17  ;;  %vm107_vm3 = vweird.f32 %v269_v18 }
 0x113   :  { %vm108_vm5 = vmor %vm106_vm4, %vm107_vm3 }
 0x114   :  { %v103_v20 = vsub.f32 1.0, %v102_v19 }
 0x116   :  { %v104_v21 = vmul.f32 %v269_v18, %v103_v20 }
 0x118   :  { %v105_v22 = vadd.f32 %v269_v18, %v104_v21 }
 0x11a   :  { %v109_v25 = vsel %vm108_vm5, %v269_v18, %v105_v22 }
 0x11b   :  { %v114_v28 = vsel %vm111_vm6, %v113_v26, %v109_v25 }
 0x11c   :  { %v127_v35 = vsub.f32 1.0, %v114_v28  ;;  %v133_v37 = vmul.f32 %v114_v28, %v51_v8 }
 0x172   :  { %v118_v27 = vpop.permute.xlu0 %117 }
 0x173   :  { %v120_v29 = vmul.f32 %v118_v27, %v114_v28 }
 0x175   :  { %122 = vrot.lane.b32.xlu1 %v120_v29, %s329_s0 }
 0x1e7   :  { %v123_v30 = vpop.permute.xlu1 %122 }
 0x1e8   :  { %v125_v31 = vadd.f32 %v123_v30, %v94_v13 }
 0x1ea   :  { %270 = vtanh.f32 %v125_v31 }
 0x1f0   :  { %v271_v32 = vpop.eup %270 }
 0x1f1   :  { %129 = vrot.lane.b32.xlu1 %v271_v32, %s330_s1 }
 0x263   :  { %v130_v36 = vpop.permute.xlu1 %129 }
 0x264   :  { %v132_v38 = vmul.f32 %v130_v36, %v127_v35 }
 0x266   :  { %v134_v39 = vadd.f32 %v133_v37, %v132_v38 }
 0x268   :  { %189 = vrot.lane.b32.xlu1 %v134_v39, %s330_s1  ;;  %v139_v40 = vpack.c.bf16 %v134_v39, %v134_v39 }
 0x26a   :  { %141 = vrot.lane.b32.xlu2 %v139_v40, %s330_s1 }
 0x2c4   :  { %v142_v41 = vpop.permute.xlu2 %141 }
 0x2c5   :  { %253 = vmatmul.msk.bf16.vlgmr.msra.gmra.mxu1 %vm53_vm1, %v142_v41 }
 0x2da   :  { %v190_v42 = vpop.permute.xlu1 %189 }
 0x2db   :  { %193 = vst.msk [vmem:[#allocation6] sm:$0x1] %vm32_vm0, %v190_v42 }
 0x2dc   :  { %215 = dma.vmem_to_hbm [thread:$0]  %s211_s20, 16, %s213_s23, [#allocation7]  }
 0x342   :  { %v170_v44 = vpop.f32.mrf.mxu1 }
 0x343   :  { %v171_v45 = vadd.f32 %v170_v44, %v156_v43 }
 0x345   :  { %v175_v46 = vsel %vm174_vm7, %v171_v45, -inf }
 0x346   :  { %176 = vmax.xlane.f32.xlu2 %v175_v46 }
 0x34a   :  { %v172_v47 = vpop.f32.mrf.mxu1 }
 0x3b9   :  { %v177_v48 = vpop.xlane.xlu2 %176 }
 0x3ba   :  { %v178_v49 = vsub.f32 %v171_v45, %v177_v48 }
 0x3bc   :  { %v179_v50 = vmul.f32 1.442695, %v178_v49 }
 0x3be   :  { %272 = vpow2.f32 %v179_v50 }
 0x3c4   :  { %v273_v51 = vpop.eup %272 }
 0x3c5   :  { %v181_v52 = vsel %vm174_vm7, %v273_v51, 0.0 }
 0x3c6   :  { %182 = vadd.xlane.f32.xlu0 %v181_v52 }
 0x439   :  { %v183_v53 = vpop.xlane.xlu0 %182 }
 0x43a   :  { %274 = vlog2.f32 %v183_v53 }
 0x440   :  { %v275_v54 = vpop.eup %274 }
 0x441   :  { %v185_v55 = vmul.f32 0.6931472, %v275_v54 }
 0x443   :  { %v186_v56 = vsub.f32 %v178_v49, %v185_v55 }
 0x445   :  { %187 = vst.msk [vmem:[#allocation4] sm:$0x1] %vm174_vm7, %v186_v56 }
 0x446   :  { %204 = dma.vmem_to_hbm [thread:$0]  %s200_s25, 16, %s202_s28, [#allocation5]  }
 0x447   :  { %324 = dma.done.wait [#allocation5], 16  }
 0x448   :  { %325 = vsyncadd [#allocation5], 4294967280 }
 0x449   :  { %326 = dma.done.wait [#allocation7], 16  }
 0x44a   :  { %327 = vsyncadd [#allocation7], 4294967280 }
 0x44b   :  { %224 = vsyncpa [#allocation5], 1 }
 0x44c   :  { %225 = vsyncpa [#allocation7], 1 }

</bundles_post_ra>
